<compile_context>
chip_gen: v7x
topology: tpu7x:2x2x1
jax: 0.10.0
libtpu: 0.0.40
codegen_flags: <defaults>
</compile_context>

<pallas_src>
import functools

import jax
import jax.numpy as jnp
from jax import lax
from jax.experimental import pallas as pl
from jax.experimental.pallas import tpu as pltpu


def _lstm_kernel(gx_ref, whh_ref, wlin_ref, blin_ref, out_ref):
    """Single-invocation kernel: whole recurrence + output head.

    gx_ref:   (T, B, 4H)  precomputed x_t @ W_ih^T + (b_ih + b_hh), time-major
    whh_ref:  (H, 4H)     hidden->gates weights (transposed)
    wlin_ref: (H, 16)     final linear weight (transposed)
    blin_ref: (1, 16)     final linear bias
    out_ref:  (B, 16)     result
    """
    T, B, _ = gx_ref.shape
    H = whh_ref.shape[0]

    w_hh = whh_ref[...]                      # hoisted loop-invariant (H, 4H)

    def step(t, carry):
        h, c = carry
        # Only the recurrent matmul is inside the serial loop.
        gates = gx_ref[t] + jnp.dot(h, w_hh,
                                    preferred_element_type=jnp.float32)
        # Full-vreg activations: one sigmoid and one tanh over (B, 4H),
        # then take i/f/o from the sigmoid and g from the tanh.
        sig = jax.nn.sigmoid(gates)
        th = jnp.tanh(gates)
        i_g = sig[:, 0 * H:1 * H]
        f_g = sig[:, 1 * H:2 * H]
        g_g = th[:, 2 * H:3 * H]
        o_g = sig[:, 3 * H:4 * H]
        c_new = f_g * c + i_g * g_g
        h_new = o_g * jnp.tanh(c_new)
        return h_new, c_new

    h0 = jnp.zeros((B, H), jnp.float32)
    c0 = jnp.zeros((B, H), jnp.float32)
    h_T, _ = lax.fori_loop(0, T, step, (h0, c0), unroll=True)

    out_ref[...] = (
        jnp.dot(h_T, wlin_ref[...], preferred_element_type=jnp.float32)
        + blin_ref[...]
    ).astype(out_ref.dtype)


@functools.partial(jax.jit, static_argnames=())
def lstm_fixed_len_forward(tokens, params):
    """tokens: (B, T) int32.  Returns (B, 16) float32."""
    emb = params["embedding"]             # (vocab, E), row 0 zeroed (padding_idx=0)
    w_ih_t = params["w_ih_t"]             # (E, 4H)
    w_hh_t = params["w_hh_t"]             # (H, 4H)
    bias = params["bias"]                 # (1, 4H)  == b_ih + b_hh
    w_lin_t = params["w_lin_t"]           # (H, 16)
    b_lin = params["b_lin"]               # (1, 16)

    B, T = tokens.shape
    E = emb.shape[1]
    H = w_hh_t.shape[0]
    OUT = w_lin_t.shape[1]

    # Embedding gather directly in time-major order — no separate transpose
    # of the (B, T, E) activation tensor.
    x_tm = jnp.take(emb, tokens.T, axis=0)                       # (T, B, E)
    # TODO(synk): nn.Dropout(0.3) is identity in eval mode; not applied.

    # Hoisted input projection: one fully-parallel matmul over all time steps.
    gx = (jnp.dot(x_tm.reshape(T * B, E), w_ih_t,
                  preferred_element_type=jnp.float32) + bias)    # (T*B, 4H)
    gx = gx.reshape(T, B, 4 * H)                                 # (T, B, 4H)

    # Single kernel invocation; the recurrence loops over T inside.
    # (On v7x with large B, a leading "parallel" batch-tile axis would let the
    #  second TensorCore process a disjoint batch slice; unnecessary at B=8.)
    out = pl.pallas_call(
        _lstm_kernel,
        out_shape=jax.ShapeDtypeStruct((B, OUT), jnp.float32),
        grid=(1,),
        in_specs=[
            pl.BlockSpec((T, B, 4 * H), lambda i: (0, 0, 0)),    # G_x
            pl.BlockSpec((H, 4 * H), lambda i: (0, 0)),          # W_hh^T
            pl.BlockSpec((H, OUT), lambda i: (0, 0)),            # W_lin^T
            pl.BlockSpec((1, OUT), lambda i: (0, 0)),            # b_lin
        ],
        out_specs=pl.BlockSpec((B, OUT), lambda i: (0, 0)),
        compiler_params=pltpu.CompilerParams(
            dimension_semantics=("arbitrary",)),
    )(gx, w_hh_t, w_lin_t, b_lin)
    return out


def init_params(key, vocab_size, embedding_dim, hidden_dim, out_dim=16):
    ks = jax.random.split(key, 7)
    scale = 1.0 / jnp.sqrt(hidden_dim)

    emb = jax.random.normal(ks[0], (vocab_size, embedding_dim), jnp.float32)
    emb = emb.at[0].set(0.0)                            # padding_idx=0

    w_ih = jax.random.uniform(ks[1], (4 * hidden_dim, embedding_dim),
                              jnp.float32, -scale, scale)
    w_hh = jax.random.uniform(ks[2], (4 * hidden_dim, hidden_dim),
                              jnp.float32, -scale, scale)
    b_ih = jax.random.uniform(ks[3], (4 * hidden_dim,), jnp.float32, -scale, scale)
    b_hh = jax.random.uniform(ks[4], (4 * hidden_dim,), jnp.float32, -scale, scale)

    lin_scale = 1.0 / jnp.sqrt(hidden_dim)
    w_lin = jax.random.uniform(ks[5], (out_dim, hidden_dim),
                               jnp.float32, -lin_scale, lin_scale)
    b_lin = jax.random.uniform(ks[6], (out_dim,), jnp.float32,
                               -lin_scale, lin_scale)

    return {
        "embedding": emb,
        "w_ih_t": w_ih.T,
        "w_hh_t": w_hh.T,
        "bias": (b_ih + b_hh)[None, :],
        "w_lin_t": w_lin.T,
        "b_lin": b_lin[None, :],
    }


def _reference_forward(tokens, params):
    """Plain-JAX reference of the same forward (for a sanity check)."""
    emb = jnp.take(params["embedding"], tokens, axis=0)  # (B, T, E)
    B, T, E = emb.shape
    H = params["w_hh_t"].shape[0]
    h = jnp.zeros((B, H), jnp.float32)
    c = jnp.zeros((B, H), jnp.float32)
    for t in range(T):
        gates = emb[:, t] @ params["w_ih_t"] + h @ params["w_hh_t"] + params["bias"]
        i = jax.nn.sigmoid(gates[:, 0 * H:1 * H])
        f = jax.nn.sigmoid(gates[:, 1 * H:2 * H])
        g = jnp.tanh(gates[:, 2 * H:3 * H])
        o = jax.nn.sigmoid(gates[:, 3 * H:4 * H])
        c = f * c + i * g
        h = o * jnp.tanh(c)
    return h @ params["w_lin_t"] + params["b_lin"]


if __name__ == "__main__":
    # vocab_size = 2 comes from words = ['', '<UNK>'] in the original module.
    VOCAB, EMB, HID = 2, 32, 32
    B, T = 8, 8

    key = jax.random.PRNGKey(0)
    k_tok, k_par = jax.random.split(key)
    tokens = jax.random.randint(k_tok, (B, T), 0, VOCAB, dtype=jnp.int32)
    params = init_params(k_par, VOCAB, EMB, HID)

    out = lstm_fixed_len_forward(tokens, params)
    out = jax.block_until_ready(out)

    ref = _reference_forward(tokens, params)
    assert out.shape == (B, 16)
    assert jnp.allclose(out, ref, atol=1e-4, rtol=1e-4)

    print("KERNEL_OK")
</pallas_src>

<mosaic_0001>
module attributes {stable_mosaic.version = 11 : i64} {
  func.func @_lstm_kernel(%arg0: i32, %arg1: memref<8x8x128xf32, #tpu.memory_space<vmem>>, %arg2: memref<32x128xf32, #tpu.memory_space<vmem>>, %arg3: memref<32x16xf32, #tpu.memory_space<vmem>>, %arg4: memref<1x16xf32, #tpu.memory_space<vmem>>, %arg5: memref<8x16xf32, #tpu.memory_space<vmem>>) attributes {dimension_semantics = [#tpu.dimension_semantics<arbitrary>], iteration_bounds = array<i64: 1>, scalar_prefetch = 0 : i64, scratch_operands = 0 : i64, tpu.core_type = #tpu.core_type<tc>, window_params = [{pipeline_mode = #tpu.pipeline_mode<synchronous>, transform_indices = @transform_0, window_bounds = array<i64: 8, 8, 128>}, {pipeline_mode = #tpu.pipeline_mode<synchronous>, transform_indices = @transform_1, window_bounds = array<i64: 32, 128>}, {pipeline_mode = #tpu.pipeline_mode<synchronous>, transform_indices = @transform_2, window_bounds = array<i64: 32, 16>}, {pipeline_mode = #tpu.pipeline_mode<synchronous>, transform_indices = @transform_3, window_bounds = array<i64: 1, 16>}, {pipeline_mode = #tpu.pipeline_mode<synchronous>, transform_indices = @transform_4, window_bounds = array<i64: 8, 16>}]} {
    %c0 = arith.constant 0 : index
    %c0_0 = arith.constant 0 : index
    %0 = vector.load %arg2[%c0, %c0_0] : memref<32x128xf32, #tpu.memory_space<vmem>>, vector<32x128xf32>
    %cst = arith.constant 0.000000e+00 : f32
    %1 = vector.broadcast %cst : f32 to vector<8x32xf32>
    %cst_1 = arith.constant 0.000000e+00 : f32
    %2 = vector.broadcast %cst_1 : f32 to vector<8x32xf32>
    %c0_i32 = arith.constant 0 : i32
    %3 = arith.index_cast %c0_i32 : i32 to index
    %c0_2 = arith.constant 0 : index
    %c0_3 = arith.constant 0 : index
    %4 = vector.load %arg1[%3, %c0_2, %c0_3] : memref<8x8x128xf32, #tpu.memory_space<vmem>>, vector<1x8x128xf32>
    %5 = vector.shape_cast %4 : vector<1x8x128xf32> to vector<8x128xf32>
    %cst_4 = arith.constant dense<0.000000e+00> : vector<8x128xf32>
    %6 = tpu.matmul %1, %0, %cst_4 {dimension_numbers = #tpu.dot_dimension_numbers<[1], [0], [0], [1], [0, 0, 1, 1], [], []>} : vector<8x32xf32>, vector<32x128xf32>, vector<8x128xf32> -> vector<8x128xf32>
    %7 = arith.addf %5, %6 : vector<8x128xf32>
    %8 = arith.negf %7 : vector<8x128xf32>
    %9 = math.exp %8 : vector<8x128xf32>
    %cst_5 = arith.constant 1.000000e+00 : f32
    %10 = vector.broadcast %cst_5 : f32 to vector<8x128xf32>
    %11 = arith.addf %10, %9 : vector<8x128xf32>
    %12 = arith.divf %10, %11 : vector<8x128xf32>
    %13 = math.tanh %7 : vector<8x128xf32>
    %14 = vector.extract_strided_slice %12 {offsets = [0, 0], sizes = [8, 32], strides = [1, 1]} : vector<8x128xf32> to vector<8x32xf32>
    %15 = vector.extract_strided_slice %12 {offsets = [0, 32], sizes = [8, 32], strides = [1, 1]} : vector<8x128xf32> to vector<8x32xf32>
    %16 = vector.extract_strided_slice %13 {offsets = [0, 64], sizes = [8, 32], strides = [1, 1]} : vector<8x128xf32> to vector<8x32xf32>
    %17 = vector.extract_strided_slice %12 {offsets = [0, 96], sizes = [8, 32], strides = [1, 1]} : vector<8x128xf32> to vector<8x32xf32>
    %18 = arith.mulf %15, %2 : vector<8x32xf32>
    %19 = arith.mulf %14, %16 : vector<8x32xf32>
    %20 = arith.addf %18, %19 : vector<8x32xf32>
    %21 = math.tanh %20 : vector<8x32xf32>
    %22 = arith.mulf %17, %21 : vector<8x32xf32>
    %c1_i32 = arith.constant 1 : i32
    %23 = arith.index_cast %c1_i32 : i32 to index
    %c0_6 = arith.constant 0 : index
    %c0_7 = arith.constant 0 : index
    %24 = vector.load %arg1[%23, %c0_6, %c0_7] : memref<8x8x128xf32, #tpu.memory_space<vmem>>, vector<1x8x128xf32>
    %25 = vector.shape_cast %24 : vector<1x8x128xf32> to vector<8x128xf32>
    %cst_8 = arith.constant dense<0.000000e+00> : vector<8x128xf32>
    %26 = tpu.matmul %22, %0, %cst_8 {dimension_numbers = #tpu.dot_dimension_numbers<[1], [0], [0], [1], [0, 0, 1, 1], [], []>} : vector<8x32xf32>, vector<32x128xf32>, vector<8x128xf32> -> vector<8x128xf32>
    %27 = arith.addf %25, %26 : vector<8x128xf32>
    %28 = arith.negf %27 : vector<8x128xf32>
    %29 = math.exp %28 : vector<8x128xf32>
    %cst_9 = arith.constant 1.000000e+00 : f32
    %30 = vector.broadcast %cst_9 : f32 to vector<8x128xf32>
    %31 = arith.addf %30, %29 : vector<8x128xf32>
    %32 = arith.divf %30, %31 : vector<8x128xf32>
    %33 = math.tanh %27 : vector<8x128xf32>
    %34 = vector.extract_strided_slice %32 {offsets = [0, 0], sizes = [8, 32], strides = [1, 1]} : vector<8x128xf32> to vector<8x32xf32>
    %35 = vector.extract_strided_slice %32 {offsets = [0, 32], sizes = [8, 32], strides = [1, 1]} : vector<8x128xf32> to vector<8x32xf32>
    %36 = vector.extract_strided_slice %33 {offsets = [0, 64], sizes = [8, 32], strides = [1, 1]} : vector<8x128xf32> to vector<8x32xf32>
    %37 = vector.extract_strided_slice %32 {offsets = [0, 96], sizes = [8, 32], strides = [1, 1]} : vector<8x128xf32> to vector<8x32xf32>
    %38 = arith.mulf %35, %20 : vector<8x32xf32>
    %39 = arith.mulf %34, %36 : vector<8x32xf32>
    %40 = arith.addf %38, %39 : vector<8x32xf32>
    %41 = math.tanh %40 : vector<8x32xf32>
    %42 = arith.mulf %37, %41 : vector<8x32xf32>
    %c2_i32 = arith.constant 2 : i32
    %43 = arith.index_cast %c2_i32 : i32 to index
    %c0_10 = arith.constant 0 : index
    %c0_11 = arith.constant 0 : index
    %44 = vector.load %arg1[%43, %c0_10, %c0_11] : memref<8x8x128xf32, #tpu.memory_space<vmem>>, vector<1x8x128xf32>
    %45 = vector.shape_cast %44 : vector<1x8x128xf32> to vector<8x128xf32>
    %cst_12 = arith.constant dense<0.000000e+00> : vector<8x128xf32>
    %46 = tpu.matmul %42, %0, %cst_12 {dimension_numbers = #tpu.dot_dimension_numbers<[1], [0], [0], [1], [0, 0, 1, 1], [], []>} : vector<8x32xf32>, vector<32x128xf32>, vector<8x128xf32> -> vector<8x128xf32>
    %47 = arith.addf %45, %46 : vector<8x128xf32>
    %48 = arith.negf %47 : vector<8x128xf32>
    %49 = math.exp %48 : vector<8x128xf32>
    %cst_13 = arith.constant 1.000000e+00 : f32
    %50 = vector.broadcast %cst_13 : f32 to vector<8x128xf32>
    %51 = arith.addf %50, %49 : vector<8x128xf32>
    %52 = arith.divf %50, %51 : vector<8x128xf32>
    %53 = math.tanh %47 : vector<8x128xf32>
    %54 = vector.extract_strided_slice %52 {offsets = [0, 0], sizes = [8, 32], strides = [1, 1]} : vector<8x128xf32> to vector<8x32xf32>
    %55 = vector.extract_strided_slice %52 {offsets = [0, 32], sizes = [8, 32], strides = [1, 1]} : vector<8x128xf32> to vector<8x32xf32>
    %56 = vector.extract_strided_slice %53 {offsets = [0, 64], sizes = [8, 32], strides = [1, 1]} : vector<8x128xf32> to vector<8x32xf32>
    %57 = vector.extract_strided_slice %52 {offsets = [0, 96], sizes = [8, 32], strides = [1, 1]} : vector<8x128xf32> to vector<8x32xf32>
    %58 = arith.mulf %55, %40 : vector<8x32xf32>
    %59 = arith.mulf %54, %56 : vector<8x32xf32>
    %60 = arith.addf %58, %59 : vector<8x32xf32>
    %61 = math.tanh %60 : vector<8x32xf32>
    %62 = arith.mulf %57, %61 : vector<8x32xf32>
    %c3_i32 = arith.constant 3 : i32
    %63 = arith.index_cast %c3_i32 : i32 to index
    %c0_14 = arith.constant 0 : index
    %c0_15 = arith.constant 0 : index
    %64 = vector.load %arg1[%63, %c0_14, %c0_15] : memref<8x8x128xf32, #tpu.memory_space<vmem>>, vector<1x8x128xf32>
    %65 = vector.shape_cast %64 : vector<1x8x128xf32> to vector<8x128xf32>
    %cst_16 = arith.constant dense<0.000000e+00> : vector<8x128xf32>
    %66 = tpu.matmul %62, %0, %cst_16 {dimension_numbers = #tpu.dot_dimension_numbers<[1], [0], [0], [1], [0, 0, 1, 1], [], []>} : vector<8x32xf32>, vector<32x128xf32>, vector<8x128xf32> -> vector<8x128xf32>
    %67 = arith.addf %65, %66 : vector<8x128xf32>
    %68 = arith.negf %67 : vector<8x128xf32>
    %69 = math.exp %68 : vector<8x128xf32>
    %cst_17 = arith.constant 1.000000e+00 : f32
    %70 = vector.broadcast %cst_17 : f32 to vector<8x128xf32>
    %71 = arith.addf %70, %69 : vector<8x128xf32>
    %72 = arith.divf %70, %71 : vector<8x128xf32>
    %73 = math.tanh %67 : vector<8x128xf32>
    %74 = vector.extract_strided_slice %72 {offsets = [0, 0], sizes = [8, 32], strides = [1, 1]} : vector<8x128xf32> to vector<8x32xf32>
    %75 = vector.extract_strided_slice %72 {offsets = [0, 32], sizes = [8, 32], strides = [1, 1]} : vector<8x128xf32> to vector<8x32xf32>
    %76 = vector.extract_strided_slice %73 {offsets = [0, 64], sizes = [8, 32], strides = [1, 1]} : vector<8x128xf32> to vector<8x32xf32>
    %77 = vector.extract_strided_slice %72 {offsets = [0, 96], sizes = [8, 32], strides = [1, 1]} : vector<8x128xf32> to vector<8x32xf32>
    %78 = arith.mulf %75, %60 : vector<8x32xf32>
    %79 = arith.mulf %74, %76 : vector<8x32xf32>
    %80 = arith.addf %78, %79 : vector<8x32xf32>
    %81 = math.tanh %80 : vector<8x32xf32>
    %82 = arith.mulf %77, %81 : vector<8x32xf32>
    %c4_i32 = arith.constant 4 : i32
    %83 = arith.index_cast %c4_i32 : i32 to index
    %c0_18 = arith.constant 0 : index
    %c0_19 = arith.constant 0 : index
    %84 = vector.load %arg1[%83, %c0_18, %c0_19] : memref<8x8x128xf32, #tpu.memory_space<vmem>>, vector<1x8x128xf32>
    %85 = vector.shape_cast %84 : vector<1x8x128xf32> to vector<8x128xf32>
    %cst_20 = arith.constant dense<0.000000e+00> : vector<8x128xf32>
    %86 = tpu.matmul %82, %0, %cst_20 {dimension_numbers = #tpu.dot_dimension_numbers<[1], [0], [0], [1], [0, 0, 1, 1], [], []>} : vector<8x32xf32>, vector<32x128xf32>, vector<8x128xf32> -> vector<8x128xf32>
    %87 = arith.addf %85, %86 : vector<8x128xf32>
    %88 = arith.negf %87 : vector<8x128xf32>
    %89 = math.exp %88 : vector<8x128xf32>
    %cst_21 = arith.constant 1.000000e+00 : f32
    %90 = vector.broadcast %cst_21 : f32 to vector<8x128xf32>
    %91 = arith.addf %90, %89 : vector<8x128xf32>
    %92 = arith.divf %90, %91 : vector<8x128xf32>
    %93 = math.tanh %87 : vector<8x128xf32>
    %94 = vector.extract_strided_slice %92 {offsets = [0, 0], sizes = [8, 32], strides = [1, 1]} : vector<8x128xf32> to vector<8x32xf32>
    %95 = vector.extract_strided_slice %92 {offsets = [0, 32], sizes = [8, 32], strides = [1, 1]} : vector<8x128xf32> to vector<8x32xf32>
    %96 = vector.extract_strided_slice %93 {offsets = [0, 64], sizes = [8, 32], strides = [1, 1]} : vector<8x128xf32> to vector<8x32xf32>
    %97 = vector.extract_strided_slice %92 {offsets = [0, 96], sizes = [8, 32], strides = [1, 1]} : vector<8x128xf32> to vector<8x32xf32>
    %98 = arith.mulf %95, %80 : vector<8x32xf32>
    %99 = arith.mulf %94, %96 : vector<8x32xf32>
    %100 = arith.addf %98, %99 : vector<8x32xf32>
    %101 = math.tanh %100 : vector<8x32xf32>
    %102 = arith.mulf %97, %101 : vector<8x32xf32>
    %c5_i32 = arith.constant 5 : i32
    %103 = arith.index_cast %c5_i32 : i32 to index
    %c0_22 = arith.constant 0 : index
    %c0_23 = arith.constant 0 : index
    %104 = vector.load %arg1[%103, %c0_22, %c0_23] : memref<8x8x128xf32, #tpu.memory_space<vmem>>, vector<1x8x128xf32>
    %105 = vector.shape_cast %104 : vector<1x8x128xf32> to vector<8x128xf32>
    %cst_24 = arith.constant dense<0.000000e+00> : vector<8x128xf32>
    %106 = tpu.matmul %102, %0, %cst_24 {dimension_numbers = #tpu.dot_dimension_numbers<[1], [0], [0], [1], [0, 0, 1, 1], [], []>} : vector<8x32xf32>, vector<32x128xf32>, vector<8x128xf32> -> vector<8x128xf32>
    %107 = arith.addf %105, %106 : vector<8x128xf32>
    %108 = arith.negf %107 : vector<8x128xf32>
    %109 = math.exp %108 : vector<8x128xf32>
    %cst_25 = arith.constant 1.000000e+00 : f32
    %110 = vector.broadcast %cst_25 : f32 to vector<8x128xf32>
    %111 = arith.addf %110, %109 : vector<8x128xf32>
    %112 = arith.divf %110, %111 : vector<8x128xf32>
    %113 = math.tanh %107 : vector<8x128xf32>
    %114 = vector.extract_strided_slice %112 {offsets = [0, 0], sizes = [8, 32], strides = [1, 1]} : vector<8x128xf32> to vector<8x32xf32>
    %115 = vector.extract_strided_slice %112 {offsets = [0, 32], sizes = [8, 32], strides = [1, 1]} : vector<8x128xf32> to vector<8x32xf32>
    %116 = vector.extract_strided_slice %113 {offsets = [0, 64], sizes = [8, 32], strides = [1, 1]} : vector<8x128xf32> to vector<8x32xf32>
    %117 = vector.extract_strided_slice %112 {offsets = [0, 96], sizes = [8, 32], strides = [1, 1]} : vector<8x128xf32> to vector<8x32xf32>
    %118 = arith.mulf %115, %100 : vector<8x32xf32>
    %119 = arith.mulf %114, %116 : vector<8x32xf32>
    %120 = arith.addf %118, %119 : vector<8x32xf32>
    %121 = math.tanh %120 : vector<8x32xf32>
    %122 = arith.mulf %117, %121 : vector<8x32xf32>
    %c6_i32 = arith.constant 6 : i32
    %123 = arith.index_cast %c6_i32 : i32 to index
    %c0_26 = arith.constant 0 : index
    %c0_27 = arith.constant 0 : index
    %124 = vector.load %arg1[%123, %c0_26, %c0_27] : memref<8x8x128xf32, #tpu.memory_space<vmem>>, vector<1x8x128xf32>
    %125 = vector.shape_cast %124 : vector<1x8x128xf32> to vector<8x128xf32>
    %cst_28 = arith.constant dense<0.000000e+00> : vector<8x128xf32>
    %126 = tpu.matmul %122, %0, %cst_28 {dimension_numbers = #tpu.dot_dimension_numbers<[1], [0], [0], [1], [0, 0, 1, 1], [], []>} : vector<8x32xf32>, vector<32x128xf32>, vector<8x128xf32> -> vector<8x128xf32>
    %127 = arith.addf %125, %126 : vector<8x128xf32>
    %128 = arith.negf %127 : vector<8x128xf32>
    %129 = math.exp %128 : vector<8x128xf32>
    %cst_29 = arith.constant 1.000000e+00 : f32
    %130 = vector.broadcast %cst_29 : f32 to vector<8x128xf32>
    %131 = arith.addf %130, %129 : vector<8x128xf32>
    %132 = arith.divf %130, %131 : vector<8x128xf32>
    %133 = math.tanh %127 : vector<8x128xf32>
    %134 = vector.extract_strided_slice %132 {offsets = [0, 0], sizes = [8, 32], strides = [1, 1]} : vector<8x128xf32> to vector<8x32xf32>
    %135 = vector.extract_strided_slice %132 {offsets = [0, 32], sizes = [8, 32], strides = [1, 1]} : vector<8x128xf32> to vector<8x32xf32>
    %136 = vector.extract_strided_slice %133 {offsets = [0, 64], sizes = [8, 32], strides = [1, 1]} : vector<8x128xf32> to vector<8x32xf32>
    %137 = vector.extract_strided_slice %132 {offsets = [0, 96], sizes = [8, 32], strides = [1, 1]} : vector<8x128xf32> to vector<8x32xf32>
    %138 = arith.mulf %135, %120 : vector<8x32xf32>
    %139 = arith.mulf %134, %136 : vector<8x32xf32>
    %140 = arith.addf %138, %139 : vector<8x32xf32>
    %141 = math.tanh %140 : vector<8x32xf32>
    %142 = arith.mulf %137, %141 : vector<8x32xf32>
    %c7_i32 = arith.constant 7 : i32
    %143 = arith.index_cast %c7_i32 : i32 to index
    %c0_30 = arith.constant 0 : index
    %c0_31 = arith.constant 0 : index
    %144 = vector.load %arg1[%143, %c0_30, %c0_31] : memref<8x8x128xf32, #tpu.memory_space<vmem>>, vector<1x8x128xf32>
    %145 = vector.shape_cast %144 : vector<1x8x128xf32> to vector<8x128xf32>
    %cst_32 = arith.constant dense<0.000000e+00> : vector<8x128xf32>
    %146 = tpu.matmul %142, %0, %cst_32 {dimension_numbers = #tpu.dot_dimension_numbers<[1], [0], [0], [1], [0, 0, 1, 1], [], []>} : vector<8x32xf32>, vector<32x128xf32>, vector<8x128xf32> -> vector<8x128xf32>
    %147 = arith.addf %145, %146 : vector<8x128xf32>
    %148 = arith.negf %147 : vector<8x128xf32>
    %149 = math.exp %148 : vector<8x128xf32>
    %cst_33 = arith.constant 1.000000e+00 : f32
    %150 = vector.broadcast %cst_33 : f32 to vector<8x128xf32>
    %151 = arith.addf %150, %149 : vector<8x128xf32>
    %152 = arith.divf %150, %151 : vector<8x128xf32>
    %153 = math.tanh %147 : vector<8x128xf32>
    %154 = vector.extract_strided_slice %152 {offsets = [0, 0], sizes = [8, 32], strides = [1, 1]} : vector<8x128xf32> to vector<8x32xf32>
    %155 = vector.extract_strided_slice %152 {offsets = [0, 32], sizes = [8, 32], strides = [1, 1]} : vector<8x128xf32> to vector<8x32xf32>
    %156 = vector.extract_strided_slice %153 {offsets = [0, 64], sizes = [8, 32], strides = [1, 1]} : vector<8x128xf32> to vector<8x32xf32>
    %157 = vector.extract_strided_slice %152 {offsets = [0, 96], sizes = [8, 32], strides = [1, 1]} : vector<8x128xf32> to vector<8x32xf32>
    %158 = arith.mulf %155, %140 : vector<8x32xf32>
    %159 = arith.mulf %154, %156 : vector<8x32xf32>
    %160 = arith.addf %158, %159 : vector<8x32xf32>
    %161 = math.tanh %160 : vector<8x32xf32>
    %162 = arith.mulf %157, %161 : vector<8x32xf32>
    %c8_i32 = arith.constant 8 : i32
    %c0_34 = arith.constant 0 : index
    %c0_35 = arith.constant 0 : index
    %163 = vector.load %arg3[%c0_34, %c0_35] : memref<32x16xf32, #tpu.memory_space<vmem>>, vector<32x16xf32>
    %cst_36 = arith.constant dense<0.000000e+00> : vector<8x16xf32>
    %164 = tpu.matmul %162, %163, %cst_36 {dimension_numbers = #tpu.dot_dimension_numbers<[1], [0], [0], [1], [0, 0, 1, 1], [], []>} : vector<8x32xf32>, vector<32x16xf32>, vector<8x16xf32> -> vector<8x16xf32>
    %c0_37 = arith.constant 0 : index
    %c0_38 = arith.constant 0 : index
    %165 = vector.load %arg4[%c0_37, %c0_38] : memref<1x16xf32, #tpu.memory_space<vmem>>, vector<1x16xf32>
    %166 = vector.broadcast %165 : vector<1x16xf32> to vector<8x16xf32>
    %167 = arith.addf %164, %166 : vector<8x16xf32>
    %c0_39 = arith.constant 0 : index
    %c0_40 = arith.constant 0 : index
    %168 = vector.load %arg5[%c0_39, %c0_40] : memref<8x16xf32, #tpu.memory_space<vmem>>, vector<8x16xf32>
    tpu.vector_store %arg5[%c0_39, %c0_40], %167 {strides = array<i32>} : memref<8x16xf32, #tpu.memory_space<vmem>>, vector<8x16xf32>,
    return
  }
  func.func @transform_0(%arg0: i32) -> (i32, i32, i32) {
    %c0_i32 = arith.constant 0 : i32
    %c0_i32_0 = arith.constant 0 : i32
    %c0_i32_1 = arith.constant 0 : i32
    %c0_i32_2 = arith.constant 0 : i32
    return %c0_i32, %c0_i32_0, %c0_i32_1 : i32, i32, i32
  }
  func.func @transform_1(%arg0: i32) -> (i32, i32) {
    %c0_i32 = arith.constant 0 : i32
    %c0_i32_0 = arith.constant 0 : i32
    %c0_i32_1 = arith.constant 0 : i32
    return %c0_i32, %c0_i32_0 : i32, i32
  }
  func.func @transform_2(%arg0: i32) -> (i32, i32) {
    %c0_i32 = arith.constant 0 : i32
    %c0_i32_0 = arith.constant 0 : i32
    %c0_i32_1 = arith.constant 0 : i32
    return %c0_i32, %c0_i32_0 : i32, i32
  }
  func.func @transform_3(%arg0: i32) -> (i32, i32) {
    %c0_i32 = arith.constant 0 : i32
    %c0_i32_0 = arith.constant 0 : i32
    %c0_i32_1 = arith.constant 0 : i32
    return %c0_i32, %c0_i32_0 : i32, i32
  }
  func.func @transform_4(%arg0: i32) -> (i32, i32) {
    %c0_i32 = arith.constant 0 : i32
    %c0_i32_0 = arith.constant 0 : i32
    %c0_i32_1 = arith.constant 0 : i32
    return %c0_i32, %c0_i32_0 : i32, i32
  }
}

</mosaic_0001>

<bundles_post_ra>
// kernel: lstm_fixed_len_forward.1
= control target key start
LH: loop header
LB: loop body
LE: loop exit
PB: predicated region body
PF: predicated region fallthrough
CT: control target
= control target key end

     0   :  { %v1254_v3 = vmov 0.0|0.0   ;;  %vm1255_vm0 = vmmov 0   ;;  %v1256_v6 = vmov 0.0   ;;  %s1445_s0 = inlined_call_operand.vmem [shape: f32[8,8,128], index: 0, kind: input, shape index: {}]   ;;  %s1446_s1 = inlined_call_operand.vmem [shape: f32[32,128], index: 1, kind: input, shape index: {}]   ;;  %s1447_s2 = inlined_call_operand.vmem [shape: f32[32,16], index: 2, kind: input, shape index: {}]   ;;  %s1448_s3 = inlined_call_operand.vmem [shape: f32[1,16], index: 3, kind: input, shape index: {}]   ;;  %s1449_s4 = inlined_call_operand.hbm [shape: f32[8,16], index: 4, kind: output, shape index: {}]  }
   0x1   :  { %v18_v0 = vld [vmem:[%s1446_s1] sm:$0xff]  ;;  %v19_v1 = vld [vmem:[%s1446_s1 + $0x8] sm:$0xff]  ;;  %v20_v2 = vld [vmem:[%s1446_s1 + $0x10] sm:$0xff]  ;;  %1106 = vmatprep.subr.bf16.mxu0 %v1254_v3  ;;  %1015 = vmatprep.mubr.msk.f32.mxu0 %vm1255_vm0, %v1256_v6 }
   0x2   :  { %v1295_v4 = vpack.c.bf16 %v19_v1, %v18_v0  ;;  %v21_v5 = vld [vmem:[%s1446_s1 + $0x18] sm:$0xff] }
   0x3   :  { %9 = vsyncpa [#allocation3], 0  ;;  %1112 = vmatprep.subr.bf16.mxu1 %v1254_v3  ;;  %1026 = vmatprep.mubr.msk.f32.mxu1 %vm1255_vm0, %v1256_v6  ;;  %v1306_v7 = vpack.c.bf16 %v21_v5, %v20_v2  ;;  %v22_v8 = vld [vmem:[%s1445_s0] sm:$0xff]  ;;  %s1257_s24 = smov 64   ;;  %s1258_s25 = smov 32   ;;  %vm23_vm1 = vcmask 261120  }
   0x4   :  { %1108 = vmatpush3.bf16.msra.mxu0 %v1295_v4  ;;  %1114 = vmatpush3.bf16.msra.mxu1 %v1295_v4  ;;  %v939_v26 = vld [vmem:[%s1445_s0 + $0x8] sm:$0xff]  ;;  %v942_v44 = vld [vmem:[%s1445_s0 + $0x10] sm:$0xff]  ;;  %v945_v62 = vld [vmem:[%s1445_s0 + $0x18] sm:$0xff]  ;;  %vm922_vm2 = vcmask 130048  }
   0x5   :  { %1109 = vmatprep.subr.bf16.mxu0 %v1254_v3  ;;  %1115 = vmatprep.subr.bf16.mxu1 %v1254_v3 }
   0x8   :  { %1111 = vmatpush3.bf16.msra.mxu0 %v1306_v7  ;;  %1117 = vmatpush3.bf16.msra.mxu1 %v1306_v7 }
   0x9   :  { %1118 = vmatprep.subr.bf16.mxu0 %v1254_v3  ;;  %1124 = vmatprep.subr.bf16.mxu1 %v1254_v3 }
   0xb   :  { %1016 = vmatmul.mubr.f32.vlgmr.msra.gmra.mrb[0].mxu0 %v1256_v6 }
   0xc   :  { %1120 = vmatpush3.bf16.msra.mxu0 %v1295_v4  ;;  %1037 = vmatprep.mubr.msk.f32.mxu0 %vm1255_vm0, %v1256_v6 }
   0xd   :  { %1121 = vmatprep.subr.bf16.mxu0 %v1254_v3 }
  0x10   :  { %1123 = vmatpush3.bf16.msra.mxu0 %v1306_v7 }
  0x11   :  { %1130 = vmatprep.subr.bf16.mxu0 %v1254_v3 }
  0xde   :  { %v93_v9 = vpop.f32.mrb[0].mxu0 }
  0xdf   :  { %v97_v10 = vadd.f32 %v93_v9, %v22_v8  ;;  %v1017_v11 = vpop.f32.mrb[1].mxu0 }
  0xe1   :  { %1166 = vtanh.f32 %v97_v10  ;;  %v938_v13 = vmul.f32 -1.442695, %v97_v10 }
  0xe3   :  { %1168 = vpow2.f32 %v938_v13 }
  0xeb   :  { %v1167_v12 = vpop.eup %1166 }
  0xec   :  { %107 = vrot.lane.b32.xlu0 %v1167_v12, %s1257_s24 }
  0xed   :  { %v1169_v14 = vpop.eup %1168 }
  0xee   :  { %v101_v15 = vadd.f32 1.0, %v1169_v14 }
  0xf0   :  { %1170 = vrcp.f32 %v101_v15 }
  0xfa   :  { %v1171_v16 = vpop.eup %1170 }
  0xfb   :  { %v105_v19 = vmul.f32 0.0, %v1171_v16 }
 0x15e   :  { %v108_v17 = vpop.permute.xlu0 %107 }
 0x15f   :  { %v110_v18 = vmul.f32 %v1171_v16, %v108_v17 }
 0x161   :  { %112 = vrot.lane.b32.xlu0 %v110_v18, %s1258_s25 }
 0x1d3   :  { %v113_v20 = vpop.permute.xlu0 %112 }
 0x1d4   :  { %v115_v21 = vadd.f32 %v113_v20, %v105_v19  ;;  %v948_v20 = vld [vmem:[%s1445_s0 + $0x20] sm:$0xff] }
 0x1d6   :  { %1172 = vtanh.f32 %v115_v21 }
 0x1e0   :  { %v1173_v22 = vpop.eup %1172 }
 0x1e1   :  { %118 = vrot.lane.b32.xlu1 %v1173_v22, %s1257_s24 }
 0x253   :  { %v119_v23 = vpop.permute.xlu1 %118 }
 0x254   :  { %v121_v24 = vmul.f32 %v1171_v16, %v119_v23 }
 0x256   :  { %125 = vrot.lane.b32.xlu1 %v121_v24, %s1258_s25 }
 0x2c8   :  { %v126_v25 = vpop.permute.xlu1 %125 }
 0x2c9   :  { %1027 = vmatmul.mubr.msk.f32.vlgmr.msra.gmra.mrb[0].mxu1 %vm23_vm1, %v126_v25 }
 0x2ca   :  { %1126 = vmatpush3.bf16.msra.mxu1 %v1295_v4  ;;  %1048 = vmatprep.mubr.msk.f32.mxu1 %vm1255_vm0, %v1256_v6 }
 0x2cb   :  { %1127 = vmatprep.subr.bf16.mxu1 %v1254_v3 }
 0x2ce   :  { %1129 = vmatpush3.bf16.msra.mxu1 %v1306_v7 }
 0x2cf   :  { %1136 = vmatprep.subr.bf16.mxu1 %v1254_v3 }
 0x39c   :  { %v195_v27 = vpop.f32.mrb[0].mxu1 }
 0x39d   :  { %v199_v28 = vadd.f32 %v939_v26, %v195_v27  ;;  %v1028_v29 = vpop.f32.mrb[1].mxu1 }
 0x39f   :  { %1174 = vtanh.f32 %v199_v28  ;;  %v941_v31 = vmul.f32 -1.442695, %v199_v28 }
 0x3a1   :  { %1176 = vpow2.f32 %v941_v31 }
 0x3a9   :  { %v1175_v30 = vpop.eup %1174 }
 0x3aa   :  { %209 = vrot.lane.b32.xlu0 %v1175_v30, %s1257_s24 }
 0x3ab   :  { %v1177_v32 = vpop.eup %1176 }
 0x3ac   :  { %v203_v33 = vadd.f32 1.0, %v1177_v32 }
 0x3ae   :  { %1178 = vrcp.f32 %v203_v33 }
 0x3b8   :  { %v1179_v34 = vpop.eup %1178 }
 0x3b9   :  { %v207_v37 = vmul.f32 %v1179_v34, %v115_v21 }
 0x41c   :  { %v210_v35 = vpop.permute.xlu0 %209 }
 0x41d   :  { %v212_v36 = vmul.f32 %v1179_v34, %v210_v35 }
 0x41f   :  { %214 = vrot.lane.b32.xlu1 %v212_v36, %s1258_s25 }
 0x491   :  { %v215_v38 = vpop.permute.xlu1 %214 }
 0x492   :  { %v217_v39 = vadd.f32 %v215_v38, %v207_v37  ;;  %v951_v38 = vld [vmem:[%s1445_s0 + $0x28] sm:$0xff] }
 0x494   :  { %1180 = vtanh.f32 %v217_v39 }
 0x49e   :  { %v1181_v40 = vpop.eup %1180 }
 0x49f   :  { %220 = vrot.lane.b32.xlu0 %v1181_v40, %s1257_s24 }
 0x511   :  { %v221_v41 = vpop.permute.xlu0 %220 }
 0x512   :  { %v223_v42 = vmul.f32 %v1179_v34, %v221_v41 }
 0x514   :  { %227 = vrot.lane.b32.xlu1 %v223_v42, %s1258_s25 }
 0x586   :  { %v228_v43 = vpop.permute.xlu1 %227 }
 0x587   :  { %1038 = vmatmul.mubr.msk.f32.vlgmr.msra.gmra.mrb[2].mxu0 %vm23_vm1, %v228_v43 }
 0x588   :  { %1132 = vmatpush3.bf16.msra.mxu0 %v1295_v4  ;;  %1059 = vmatprep.mubr.msk.f32.mxu0 %vm1255_vm0, %v1256_v6 }
 0x589   :  { %1133 = vmatprep.subr.bf16.mxu0 %v1254_v3 }
 0x58c   :  { %1135 = vmatpush3.bf16.msra.mxu0 %v1306_v7 }
 0x58d   :  { %1142 = vmatprep.subr.bf16.mxu0 %v1254_v3 }
 0x65a   :  { %v297_v45 = vpop.f32.mrb[2].mxu0 }
 0x65b   :  { %v301_v46 = vadd.f32 %v942_v44, %v297_v45  ;;  %v1039_v47 = vpop.f32.mrb[3].mxu0 }
 0x65d   :  { %1182 = vtanh.f32 %v301_v46  ;;  %v944_v49 = vmul.f32 -1.442695, %v301_v46 }
 0x65f   :  { %1184 = vpow2.f32 %v944_v49 }
 0x667   :  { %v1183_v48 = vpop.eup %1182 }
 0x668   :  { %311 = vrot.lane.b32.xlu0 %v1183_v48, %s1257_s24 }
 0x669   :  { %v1185_v50 = vpop.eup %1184 }
 0x66a   :  { %v305_v51 = vadd.f32 1.0, %v1185_v50 }
 0x66c   :  { %1186 = vrcp.f32 %v305_v51 }
 0x676   :  { %v1187_v52 = vpop.eup %1186 }
 0x677   :  { %v309_v55 = vmul.f32 %v1187_v52, %v217_v39 }
 0x6da   :  { %v312_v53 = vpop.permute.xlu0 %311 }
 0x6db   :  { %v314_v54 = vmul.f32 %v1187_v52, %v312_v53 }
 0x6dd   :  { %316 = vrot.lane.b32.xlu1 %v314_v54, %s1258_s25  ;;  %v954_v54 = vld [vmem:[%s1445_s0 + $0x30] sm:$0xff] }
 0x74f   :  { %v317_v56 = vpop.permute.xlu1 %316 }
 0x750   :  { %v319_v57 = vadd.f32 %v317_v56, %v309_v55 }
 0x752   :  { %1188 = vtanh.f32 %v319_v57 }
 0x75c   :  { %v1189_v58 = vpop.eup %1188 }
 0x75d   :  { %322 = vrot.lane.b32.xlu0 %v1189_v58, %s1257_s24 }
 0x7cf   :  { %v323_v59 = vpop.permute.xlu0 %322 }
 0x7d0   :  { %v325_v60 = vmul.f32 %v1187_v52, %v323_v59 }
 0x7d2   :  { %329 = vrot.lane.b32.xlu1 %v325_v60, %s1258_s25 }
 0x844   :  { %v330_v61 = vpop.permute.xlu1 %329 }
 0x845   :  { %1049 = vmatmul.mubr.msk.f32.vlgmr.msra.gmra.mrb[2].mxu1 %vm23_vm1, %v330_v61 }
 0x846   :  { %1138 = vmatpush3.bf16.msra.mxu1 %v1295_v4  ;;  %1070 = vmatprep.mubr.msk.f32.mxu1 %vm1255_vm0, %v1256_v6 }
 0x847   :  { %1139 = vmatprep.subr.bf16.mxu1 %v1254_v3 }
 0x84a   :  { %1141 = vmatpush3.bf16.msra.mxu1 %v1306_v7 }
 0x84b   :  { %1148 = vmatprep.subr.bf16.mxu1 %v1254_v3 }
 0x918   :  { %v399_v63 = vpop.f32.mrb[2].mxu1 }
 0x919   :  { %v403_v0 = vadd.f32 %v945_v62, %v399_v63  ;;  %v1050_v1 = vpop.f32.mrb[3].mxu1 }
 0x91b   :  { %1190 = vtanh.f32 %v403_v0  ;;  %v947_v5 = vmul.f32 -1.442695, %v403_v0 }
 0x91d   :  { %1192 = vpow2.f32 %v947_v5 }
 0x925   :  { %v1191_v2 = vpop.eup %1190 }
 0x926   :  { %413 = vrot.lane.b32.xlu0 %v1191_v2, %s1257_s24 }
 0x927   :  { %v1193_v8 = vpop.eup %1192 }
 0x928   :  { %v407_v9 = vadd.f32 1.0, %v1193_v8 }
 0x92a   :  { %1194 = vrcp.f32 %v407_v9 }
 0x934   :  { %v1195_v10 = vpop.eup %1194 }
 0x935   :  { %v411_v13 = vmul.f32 %v1195_v10, %v319_v57 }
 0x998   :  { %v414_v11 = vpop.permute.xlu0 %413 }
 0x999   :  { %v416_v12 = vmul.f32 %v1195_v10, %v414_v11  ;;  %v957_v11 = vld [vmem:[%s1445_s0 + $0x38] sm:$0xff] }
 0x99b   :  { %418 = vrot.lane.b32.xlu1 %v416_v12, %s1258_s25 }
 0xa0d   :  { %v419_v14 = vpop.permute.xlu1 %418 }
 0xa0e   :  { %v421_v15 = vadd.f32 %v419_v14, %v411_v13 }
 0xa10   :  { %1196 = vtanh.f32 %v421_v15 }
 0xa1a   :  { %v1197_v16 = vpop.eup %1196 }
 0xa1b   :  { %424 = vrot.lane.b32.xlu0 %v1197_v16, %s1257_s24 }
 0xa8d   :  { %v425_v17 = vpop.permute.xlu0 %424 }
 0xa8e   :  { %v427_v18 = vmul.f32 %v1195_v10, %v425_v17 }
 0xa90   :  { %431 = vrot.lane.b32.xlu1 %v427_v18, %s1258_s25 }
 0xb02   :  { %v432_v19 = vpop.permute.xlu1 %431 }
 0xb03   :  { %1060 = vmatmul.mubr.msk.f32.vlgmr.msra.gmra.mrb[4].mxu0 %vm23_vm1, %v432_v19 }
 0xb04   :  { %1144 = vmatpush3.bf16.msra.mxu0 %v1295_v4  ;;  %1081 = vmatprep.mubr.msk.f32.mxu0 %vm1255_vm0, %v1256_v6 }
 0xb05   :  { %1145 = vmatprep.subr.bf16.mxu0 %v1254_v3 }
 0xb08   :  { %1147 = vmatpush3.bf16.msra.mxu0 %v1306_v7 }
 0xb09   :  { %1154 = vmatprep.subr.bf16.mxu0 %v1254_v3 }
 0xbd6   :  { %v501_v21 = vpop.f32.mrb[4].mxu0 }
 0xbd7   :  { %v505_v22 = vadd.f32 %v948_v20, %v501_v21  ;;  %v1061_v23 = vpop.f32.mrb[5].mxu0 }
 0xbd9   :  { %1198 = vtanh.f32 %v505_v22  ;;  %v950_v25 = vmul.f32 -1.442695, %v505_v22 }
 0xbdb   :  { %1200 = vpow2.f32 %v950_v25  ;;  %v836_v25 = vld [vmem:[%s1447_s2] sm:$0xff] }
 0xbe3   :  { %v1199_v24 = vpop.eup %1198 }
 0xbe4   :  { %515 = vrot.lane.b32.xlu0 %v1199_v24, %s1257_s24 }
 0xbe5   :  { %v1201_v26 = vpop.eup %1200 }
 0xbe6   :  { %v509_v27 = vadd.f32 1.0, %v1201_v26  ;;  %v837_v26 = vld [vmem:[%s1447_s2 + $0x8] sm:$0xff] }
 0xbe8   :  { %1202 = vrcp.f32 %v509_v27  ;;  %v838_v27 = vld [vmem:[%s1447_s2 + $0x10] sm:$0xff] }
 0xbf2   :  { %v1203_v28 = vpop.eup %1202 }
 0xbf3   :  { %v513_v31 = vmul.f32 %v1203_v28, %v421_v15 }
 0xc56   :  { %v516_v29 = vpop.permute.xlu0 %515 }
 0xc57   :  { %v518_v30 = vmul.f32 %v1203_v28, %v516_v29  ;;  %v839_v29 = vld [vmem:[%s1447_s2 + $0x18] sm:$0xff]  ;;  %s1259_s2 = smov [#allocation2]  }
 0xc58   :  { %s930_s1 = sshll.u32 %s1259_s2, 4  ;;  %s931_s1 = int_to_ptr.vmem [resolvable:$true] %s930_s1 }
 0xc59   :  { %520 = vrot.lane.b32.xlu1 %v518_v30, %s1258_s25  ;;  %v1158_v30 = vpack.c.bf16 %v839_v29, %v838_v27  ;;  %s1230_s23 = scalar_lea.vmem %s931_s1, 128  ;;  %p1235_p1 = scmp.lt.s32.totalorder %s931_s1, %s931_s1 }
 0xc5a   :  { %p1231_p0 = scmp.ne.s32.totalorder %s931_s1, %s1230_s23  ;;  %p1236_p2 = scmp.lt.s32.totalorder %s1230_s23, %s1230_s23 }
 0xc5c   :  { %p1237_p3 = por %p1236_p2, %p1235_p1 }
 0xc5e   :  { %p1238_p4 = pnand %p1237_p3, %p1231_p0 }
 0xccb   :  { %v521_v32 = vpop.permute.xlu1 %520 }
 0xccc   :  { %v523_v33 = vadd.f32 %v521_v32, %v513_v31 }
 0xcce   :  { %1204 = vtanh.f32 %v523_v33 }
 0xcd8   :  { %v1205_v34 = vpop.eup %1204 }
 0xcd9   :  { %526 = vrot.lane.b32.xlu0 %v1205_v34, %s1257_s24 }
 0xd4b   :  { %v527_v35 = vpop.permute.xlu0 %526 }
 0xd4c   :  { %v529_v36 = vmul.f32 %v1203_v28, %v527_v35  ;;  %v1155_v28 = vpack.c.bf16 %v837_v26, %v836_v25  ;;  %v960_v35 = vld [vmem:[%s1448_s3] ss:$0 sm:$0xff] }
 0xd4e   :  { %533 = vrot.lane.b32.xlu1 %v529_v36, %s1258_s25 }
 0xdc0   :  { %v534_v37 = vpop.permute.xlu1 %533 }
 0xdc1   :  { %1071 = vmatmul.mubr.msk.f32.vlgmr.msra.gmra.mrb[4].mxu1 %vm23_vm1, %v534_v37 }
 0xdc2   :  { %1150 = vmatpush3.bf16.msra.mxu1 %v1295_v4  ;;  %1092 = vmatprep.mubr.msk.f32.mxu1 %vm1255_vm0, %v1256_v6 }
 0xdc3   :  { %1151 = vmatprep.subr.bf16.mxu1 %v1254_v3 }
 0xdc6   :  { %1153 = vmatpush3.bf16.msra.mxu1 %v1306_v7 }
 0xe94   :  { %v603_v39 = vpop.f32.mrb[4].mxu1 }
 0xe95   :  { %v607_v40 = vadd.f32 %v951_v38, %v603_v39  ;;  %v1072_v41 = vpop.f32.mrb[5].mxu1 }
 0xe97   :  { %1206 = vtanh.f32 %v607_v40  ;;  %v953_v43 = vmul.f32 -1.442695, %v607_v40 }
 0xe99   :  { %1208 = vpow2.f32 %v953_v43 }
 0xea1   :  { %v1207_v42 = vpop.eup %1206 }
 0xea2   :  { %617 = vrot.lane.b32.xlu0 %v1207_v42, %s1257_s24 }
 0xea3   :  { %v1209_v4 = vpop.eup %1208 }
 0xea4   :  { %v611_v44 = vadd.f32 1.0, %v1209_v4 }
 0xea6   :  { %1210 = vrcp.f32 %v611_v44 }
 0xeb0   :  { %v1211_v45 = vpop.eup %1210 }
 0xeb1   :  { %v615_v7 = vmul.f32 %v1211_v45, %v523_v33 }
 0xf14   :  { %v618_v46 = vpop.permute.xlu0 %617 }
 0xf15   :  { %v620_v47 = vmul.f32 %v1211_v45, %v618_v46 }
 0xf17   :  { %622 = vrot.lane.b32.xlu1 %v620_v47, %s1258_s25 }
 0xf89   :  { %v623_v48 = vpop.permute.xlu1 %622 }
 0xf8a   :  { %v625_v49 = vadd.f32 %v623_v48, %v615_v7 }
 0xf8c   :  { %1212 = vtanh.f32 %v625_v49 }
 0xf96   :  { %v1213_v50 = vpop.eup %1212 }
 0xf97   :  { %628 = vrot.lane.b32.xlu0 %v1213_v50, %s1257_s24 }
0x1009   :  { %v629_v51 = vpop.permute.xlu0 %628 }
0x100a   :  { %v631_v52 = vmul.f32 %v1211_v45, %v629_v51 }
0x100c   :  { %635 = vrot.lane.b32.xlu1 %v631_v52, %s1258_s25 }
0x107e   :  { %v636_v53 = vpop.permute.xlu1 %635 }
0x107f   :  { %1082 = vmatmul.mubr.msk.f32.vlgmr.msra.gmra.mrb[6].mxu0 %vm23_vm1, %v636_v53 }
0x1080   :  { %1103 = vmatprep.mubr.msk.f32.mxu0 %vm1255_vm0, %v1256_v6  ;;  %1156 = vmatpush3.bf16.msra.mxu0 %v1155_v28 }
0x1081   :  { %1157 = vmatprep.subr.bf16.mxu0 %v1254_v3 }
0x1084   :  { %1159 = vmatpush3.bf16.msra.mxu0 %v1158_v30 }
0x1152   :  { %v705_v55 = vpop.f32.mrb[6].mxu0 }
0x1153   :  { %v709_v56 = vadd.f32 %v954_v54, %v705_v55  ;;  %v1083_v57 = vpop.f32.mrb[7].mxu0 }
0x1155   :  { %1214 = vtanh.f32 %v709_v56  ;;  %v956_v59 = vmul.f32 -1.442695, %v709_v56 }
0x1157   :  { %1216 = vpow2.f32 %v956_v59 }
0x115f   :  { %v1215_v58 = vpop.eup %1214 }
0x1160   :  { %719 = vrot.lane.b32.xlu0 %v1215_v58, %s1257_s24 }
0x1161   :  { %v1217_v60 = vpop.eup %1216 }
0x1162   :  { %v713_v61 = vadd.f32 1.0, %v1217_v60 }
0x1164   :  { %1218 = vrcp.f32 %v713_v61 }
0x116e   :  { %v1219_v62 = vpop.eup %1218 }
0x116f   :  { %v717_v6 = vmul.f32 %v1219_v62, %v625_v49 }
0x11d2   :  { %v720_v63 = vpop.permute.xlu0 %719 }
0x11d3   :  { %v722_v0 = vmul.f32 %v1219_v62, %v720_v63 }
0x11d5   :  { %724 = vrot.lane.b32.xlu1 %v722_v0, %s1258_s25 }
0x1247   :  { %v725_v1 = vpop.permute.xlu1 %724 }
0x1248   :  { %v727_v2 = vadd.f32 %v725_v1, %v717_v6 }
0x124a   :  { %1220 = vtanh.f32 %v727_v2 }
0x1254   :  { %v1221_v5 = vpop.eup %1220 }
0x1255   :  { %730 = vrot.lane.b32.xlu0 %v1221_v5, %s1257_s24 }
0x12c7   :  { %v731_v8 = vpop.permute.xlu0 %730 }
0x12c8   :  { %v733_v9 = vmul.f32 %v1219_v62, %v731_v8 }
0x12ca   :  { %737 = vrot.lane.b32.xlu1 %v733_v9, %s1258_s25 }
0x133c   :  { %v738_v10 = vpop.permute.xlu1 %737 }
0x133d   :  { %1093 = vmatmul.mubr.msk.f32.vlgmr.msra.gmra.mrb[6].mxu1 %vm23_vm1, %v738_v10 }
0x1410   :  { %v807_v12 = vpop.f32.mrb[6].mxu1 }
0x1411   :  { %v811_v13 = vadd.f32 %v957_v11, %v807_v12  ;;  %v1094_v14 = vpop.f32.mrb[7].mxu1 }
0x1413   :  { %1222 = vtanh.f32 %v811_v13  ;;  %v959_v16 = vmul.f32 -1.442695, %v811_v13 }
0x1415   :  { %1224 = vpow2.f32 %v959_v16 }
0x141d   :  { %v1223_v15 = vpop.eup %1222 }
0x141e   :  { %821 = vrot.lane.b32.xlu0 %v1223_v15, %s1257_s24 }
0x141f   :  { %v1225_v17 = vpop.eup %1224 }
0x1420   :  { %v815_v18 = vadd.f32 1.0, %v1225_v17 }
0x1422   :  { %1226 = vrcp.f32 %v815_v18 }
0x142c   :  { %v1227_v19 = vpop.eup %1226 }
0x142d   :  { %v819_v22 = vmul.f32 %v1227_v19, %v727_v2 }
0x1490   :  { %v822_v20 = vpop.permute.xlu0 %821 }
0x1491   :  { %v824_v21 = vmul.f32 %v1227_v19, %v822_v20 }
0x1493   :  { %826 = vrot.lane.b32.xlu1 %v824_v21, %s1258_s25 }
0x1505   :  { %v827_v23 = vpop.permute.xlu1 %826 }
0x1506   :  { %v829_v24 = vadd.f32 %v827_v23, %v819_v22 }
0x1508   :  { %1228 = vtanh.f32 %v829_v24 }
0x1512   :  { %v1229_v31 = vpop.eup %1228 }
0x1513   :  { %832 = vrot.lane.b32.xlu0 %v1229_v31, %s1257_s24 }
0x1585   :  { %v833_v32 = vpop.permute.xlu0 %832 }
0x1586   :  { %v835_v33 = vmul.f32 %v1227_v19, %v833_v32 }
0x1588   :  { %848 = vrot.lane.b32.xlu1 %v835_v33, %s1258_s25 }
0x15fa   :  { %v849_v34 = vpop.permute.xlu1 %848 }
0x15fb   :  { %1104 = vmatmul.mubr.msk.f32.vlgmr.msra.gmra.mrb[8].mxu0 %vm23_vm1, %v849_v34 }
0x16ce   :  { %v918_v36 = vpop.f32.mrb[8].mxu0 }
0x16cf   :  { %v919_v3 = vadd.f32 %v960_v35, %v918_v36  ;;  %v1105_v37 = vpop.f32.mrb[9].mxu0 }
0x16d1   :  { %923 = vst.msk [vmem:[#allocation2] sm:$0xff] %vm922_vm2, %v919_v3 }
0x16d2   :  { %1241 = shalt.err (!%p1238_p4)
}
0x16d3   :  { %s1242_s26 = scalar_lea.hbm %s1449_s4, 128 }
0x16d4   :  { %p1243_p5 = scmp.ne.s32.totalorder %s1449_s4, %s1242_s26  ;;  %p1246_p6 = scmp.lt.u32.totalorder %s1242_s26, %s1449_s4 }
0x16d6   :  { %p1248_p7 = pnand %p1246_p6, %p1243_p5 }
0x16d8   :  { %1251 = shalt.err (!%p1248_p7)
}
0x16d9   :  { %933 = dma.vmem_to_hbm [thread:$0]  %s931_s1, 128, %s1449_s4, [#allocation3]  }
0x16da   :  { %1252 = dma.done.wait [#allocation3], 128  }
0x16db   :  { %1253 = vsyncadd [#allocation3], 4294967168 }
0x16dc   :  { %937 = vsyncpa [#allocation3], 1 }

</bundles_post_ra>
